<compile_context>
chip_gen: v7x
topology: tpu7x:2x2x1
jax: 0.10.0
libtpu: 0.0.40
codegen_flags: <defaults>
</compile_context>

<pallas_src>
import jax
import jax.numpy as jnp
from jax.experimental import pallas as pl
from jax.experimental.pallas import tpu as pltpu


def _biaffine_kernel(x_ref, u_ref, yt_ref, o_ref):
    # x_ref : (1, tsx, I1)   row tile of bias-augmented x (resident across o)
    # u_ref : (1, I1, I2)    U slice for output channel o
    # yt_ref: (1, I2, Sy)    bias-augmented y, pre-transposed (resident across i, o)
    # o_ref : (1, 1, tsx, Sy)
    t = jnp.dot(x_ref[0], u_ref[0], preferred_element_type=jnp.float32)      # (tsx, I2)
    s = jnp.dot(t.astype(yt_ref.dtype), yt_ref[0],
                preferred_element_type=jnp.float32)                          # (tsx, Sy)
    o_ref[0, 0] = s.astype(o_ref.dtype)


def _auto_tile_sx(sx, i1, i2, sy, dtype_bytes, *, max_tile=512,
                  vmem_budget=24 * 1024 * 1024):
    """Pick a row tile over Sx: as large as possible, multiple of 8, VMEM-safe."""
    if sx <= max_tile:
        return sx  # full dim -> always a legal block shape
    fixed = 2 * (i1 * i2 + i2 * sy) * dtype_bytes          # U slice + y^T (double buffered)
    per_row = 2 * (i1 + sy) * dtype_bytes                  # x row + out row (double buffered)
    t = (vmem_budget - fixed) // max(per_row, 1)
    t = max(8, min(max_tile, t))
    return max(8, (t // 8) * 8)


def biaffine(x, y, u, *, bias_x=True, bias_y=True, tile_sx=None):
    """Biaffine forward.

    x: [B, Sx, in_size], y: [B, Sy, in_size]
    u: [in_size + bias_x, out_size, in_size + bias_y]   (PyTorch parameter layout)
    returns: [B, Sx, Sy, out_size]
    """
    if bias_x:
        x = jnp.concatenate([x, jnp.ones_like(x[..., :1])], axis=-1)
    if bias_y:
        y = jnp.concatenate([y, jnp.ones_like(y[..., :1])], axis=-1)

    B, Sx, I1 = x.shape
    By, Sy, I2 = y.shape
    assert B == By
    assert u.shape[0] == I1 and u.shape[2] == I2, (u.shape, I1, I2)
    O = u.shape[1]
    dtype = x.dtype
    dtype_bytes = dtype.itemsize

    # TODO(synk): in a real model store U pre-arranged as [O, I1, I2] so this
    # per-call transpose disappears from the hot path.
    u_o = jnp.transpose(u, (1, 0, 2))        # [O, I1, I2]
    yt = jnp.transpose(y, (0, 2, 1))         # [B, I2, Sy] -> plain MXU matmul in-kernel

    tsx = tile_sx if tile_sx is not None else _auto_tile_sx(Sx, I1, I2, Sy, dtype_bytes)
    n_i = pl.cdiv(Sx, tsx)

    # TODO(synk): for very large in_size (U slice no longer VMEM-resident) add a K
    # grid axis over I1 with an f32 accumulator scratch instead of a full-I1 block.
    cost = pl.CostEstimate(
        flops=2 * B * O * Sx * (I1 * I2 + I2 * Sy),
        transcendentals=0,
        bytes_accessed=(x.size + yt.size + u_o.size + B * O * Sx * Sy) * dtype_bytes,
    )

    out = pl.pallas_call(
        _biaffine_kernel,
        out_shape=jax.ShapeDtypeStruct((B, O, Sx, Sy), dtype),
        grid_spec=pltpu.PrefetchScalarGridSpec(
            num_scalar_prefetch=0,
            grid=(B, n_i, O),
            in_specs=[
                pl.BlockSpec((1, tsx, I1), lambda b, i, o: (b, i, 0)),   # x row tile
                pl.BlockSpec((1, I1, I2), lambda b, i, o: (o, 0, 0)),    # U[:, o, :]
                pl.BlockSpec((1, I2, Sy), lambda b, i, o: (b, 0, 0)),    # y^T (per batch)
            ],
            out_specs=pl.BlockSpec((1, 1, tsx, Sy), lambda b, i, o: (b, o, i, 0)),
        ),
        compiler_params=pltpu.CompilerParams(
            dimension_semantics=("parallel", "parallel", "parallel"),
            vmem_limit_bytes=48 * 1024 * 1024,   # stays under v7x 64 MiB / TC
        ),
        cost_estimate=cost,
    )(x, u_o, yt)

    # [B, O, Sx, Sy] -> [B, Sx, Sy, O] to match torch.einsum('bxi,ioj,byj->bxyo').
    return jnp.transpose(out, (0, 2, 3, 1))


if __name__ == "__main__":
    # Small shapes consistent with the module: batch=2, seq=8, in_size=32, out_size=8.
    batch, seq, in_size, out_size = 2, 8, 32, 8

    key = jax.random.PRNGKey(0)
    kx, ky, ku = jax.random.split(key, 3)
    x = jax.random.normal(kx, (batch, seq, in_size), jnp.float32)
    y = jax.random.normal(ky, (batch, seq, in_size), jnp.float32)
    # torch.randn-style parameter: [in+1, out, in+1] (bias_x=True, bias_y=True).
    u = jax.random.normal(ku, (in_size + 1, out_size, in_size + 1), jnp.float32)

    out = biaffine(x, y, u)
    out = jax.block_until_ready(out)

    # Pure-JAX reference (same math as the PyTorch forward).
    xa = jnp.concatenate([x, jnp.ones_like(x[..., :1])], axis=-1)
    ya = jnp.concatenate([y, jnp.ones_like(y[..., :1])], axis=-1)
    ref = jnp.einsum("bxi,ioj,byj->bxyo", xa, u, ya,
                     precision=jax.lax.Precision.HIGHEST)

    assert out.shape == (batch, seq, seq, out_size)
    err = float(jnp.max(jnp.abs(out - ref)))
    assert jnp.allclose(out, ref, atol=1e-2, rtol=1e-3), f"max abs err = {err}"

    print("KERNEL_OK")
</pallas_src>

<mosaic_0001>
module attributes {stable_mosaic.version = 11 : i64} {
  func.func @_biaffine_kernel(%arg0: i32, %arg1: i32, %arg2: i32, %arg3: memref<1x8x33xf32, #tpu.memory_space<vmem>>, %arg4: memref<1x33x33xf32, #tpu.memory_space<vmem>>, %arg5: memref<1x33x8xf32, #tpu.memory_space<vmem>>, %arg6: memref<1x1x8x8xf32, #tpu.memory_space<vmem>>) attributes {dimension_semantics = [#tpu.dimension_semantics<parallel>, #tpu.dimension_semantics<parallel>, #tpu.dimension_semantics<parallel>], iteration_bounds = array<i64: 2, 1, 8>, scalar_prefetch = 0 : i64, scratch_operands = 0 : i64, tpu.core_type = #tpu.core_type<tc>, window_params = [{transform_indices = @transform_0, window_bounds = array<i64: 1, 8, 33>}, {transform_indices = @transform_1, window_bounds = array<i64: 1, 33, 33>}, {transform_indices = @transform_2, window_bounds = array<i64: 1, 33, 8>}, {transform_indices = @transform_3, window_bounds = array<i64: 1, 1, 8, 8>}]} {
    %c0 = arith.constant 0 : index
    %c0_0 = arith.constant 0 : index
    %c0_1 = arith.constant 0 : index
    %0 = vector.load %arg3[%c0, %c0_0, %c0_1] : memref<1x8x33xf32, #tpu.memory_space<vmem>>, vector<1x8x33xf32>
    %1 = vector.shape_cast %0 : vector<1x8x33xf32> to vector<8x33xf32>
    %c0_2 = arith.constant 0 : index
    %c0_3 = arith.constant 0 : index
    %c0_4 = arith.constant 0 : index
    %2 = vector.load %arg4[%c0_2, %c0_3, %c0_4] : memref<1x33x33xf32, #tpu.memory_space<vmem>>, vector<1x33x33xf32>
    %3 = vector.shape_cast %2 : vector<1x33x33xf32> to vector<33x33xf32>
    %cst = arith.constant dense<0.000000e+00> : vector<8x33xf32>
    %4 = tpu.matmul %1, %3, %cst {dimension_numbers = #tpu.dot_dimension_numbers<[1], [0], [0], [1], [0, 0, 1, 1], [], []>} : vector<8x33xf32>, vector<33x33xf32>, vector<8x33xf32> -> vector<8x33xf32>
    %c0_5 = arith.constant 0 : index
    %c0_6 = arith.constant 0 : index
    %c0_7 = arith.constant 0 : index
    %5 = vector.load %arg5[%c0_5, %c0_6, %c0_7] : memref<1x33x8xf32, #tpu.memory_space<vmem>>, vector<1x33x8xf32>
    %6 = vector.shape_cast %5 : vector<1x33x8xf32> to vector<33x8xf32>
    %cst_8 = arith.constant dense<0.000000e+00> : vector<8x8xf32>
    %7 = tpu.matmul %4, %6, %cst_8 {dimension_numbers = #tpu.dot_dimension_numbers<[1], [0], [0], [1], [0, 0, 1, 1], [], []>} : vector<8x33xf32>, vector<33x8xf32>, vector<8x8xf32> -> vector<8x8xf32>
    %c0_9 = arith.constant 0 : index
    %c0_10 = arith.constant 0 : index
    %c0_11 = arith.constant 0 : index
    %c0_12 = arith.constant 0 : index
    %8 = vector.load %arg6[%c0_9, %c0_10, %c0_11, %c0_12] : memref<1x1x8x8xf32, #tpu.memory_space<vmem>>, vector<1x1x8x8xf32>
    %9 = vector.shape_cast %8 : vector<1x1x8x8xf32> to vector<8x8xf32>
    %10 = vector.shape_cast %7 : vector<8x8xf32> to vector<1x1x8x8xf32>
    tpu.vector_store %arg6[%c0_9, %c0_10, %c0_11, %c0_12], %10 {strides = array<i32>} : memref<1x1x8x8xf32, #tpu.memory_space<vmem>>, vector<1x1x8x8xf32>,
    return
  }
  func.func @transform_0(%arg0: i32, %arg1: i32, %arg2: i32) -> (i32, i32, i32) {
    %c0_i32 = arith.constant 0 : i32
    %c0_i32_0 = arith.constant 0 : i32
    return %arg0, %arg1, %c0_i32 : i32, i32, i32
  }
  func.func @transform_1(%arg0: i32, %arg1: i32, %arg2: i32) -> (i32, i32, i32) {
    %c0_i32 = arith.constant 0 : i32
    %c0_i32_0 = arith.constant 0 : i32
    %c0_i32_1 = arith.constant 0 : i32
    return %arg2, %c0_i32, %c0_i32_0 : i32, i32, i32
  }
  func.func @transform_2(%arg0: i32, %arg1: i32, %arg2: i32) -> (i32, i32, i32) {
    %c0_i32 = arith.constant 0 : i32
    %c0_i32_0 = arith.constant 0 : i32
    %c0_i32_1 = arith.constant 0 : i32
    return %arg0, %c0_i32, %c0_i32_0 : i32, i32, i32
  }
  func.func @transform_3(%arg0: i32, %arg1: i32, %arg2: i32) -> (i32, i32, i32, i32) {
    %c0_i32 = arith.constant 0 : i32
    %c0_i32_0 = arith.constant 0 : i32
    return %arg0, %arg2, %arg1, %c0_i32 : i32, i32, i32, i32
  }
}

</mosaic_0001>

<bundles_post_ra>
// kernel: tpu_custom_call.1
= control target key start
LH: loop header
LB: loop body
LE: loop exit
PB: predicated region body
PF: predicated region fallthrough
CT: control target
= control target key end

     0   :  { %8 = vsyncpa [#allocation3], 0  ;;  %s934_s0 = inlined_call_operand.vmem [shape: f32[2,8,33], index: 0, kind: input, shape index: {}]   ;;  %s935_s1 = inlined_call_operand.vmem [shape: f32[8,33,33], index: 1, kind: input, shape index: {}]   ;;  %s936_s2 = inlined_call_operand.vmem [shape: f32[2,33,8], index: 2, kind: input, shape index: {}]   ;;  %s937_s3 = inlined_call_operand.hbm [shape: f32[2,8,8,8], index: 3, kind: output, shape index: {}]  }
   0x1   :  { %10 = vsyncpa [#allocation3 + $0x1], 0  ;;  %s791_s12 = smov 0   ;;  %s793_s13 = smov 0  }
   0x2   :  { %s795_s14 = smov 0   ;;  %s797_s15 = smov 0  }
   0x3   :  { %s799_s16 = smov 0   ;;  %s801_s17 = smov 0  }
   0x4   :  { %s803_s18 = smov 0   ;;  %s805_s19 = smov 0  }
   0x5 LB: > { %s527_s20 = sadd.s32 4294967295, %s765_s19   ;;  %s528_s21 = sadd.s32 4294967294, %s765_s19   ;;  %s765_s19 = sphi %s805_s19, %s16_s19   ;;  %s761_s18 = sphi %s803_s18, %s946_s18   ;;  %s757_s17 = sphi %s801_s17, %s945_s17   ;;  %s753_s16 = sphi %s799_s16, %s944_s16   ;;  %s749_s15 = sphi %s797_s15, %s943_s15   ;;  %s745_s14 = sphi %s795_s14, %s942_s14   ;;  %s741_s13 = sphi %s793_s13, %s941_s13   ;;  %s737_s12 = sphi %s791_s12, %s940_s12  }
   0x6   : > { %s28_s22 = sadd.s32 1, %s757_s17  ;;  %s35_s23 = sadd.s32 1, %s761_s18 }
   0x7   : > { %p29_p0 = scmp.ge.s32.totalorder %s28_s22, 8  ;;  %p136_p1 = scmp.ne.s32.totalorder %s745_s14, %s741_s13 }
   0x8   : > { %p137_p2 = scmp.eq.s32.totalorder %s527_s20, 15  ;;  %p142_p5 = scmp.ne.s32.totalorder %s741_s13, %s737_s12 }
   0x9   : > { %s948_s22 = smov (%p29_p0, %s28_s22), 0  ;;  %s950_s23 = smov (!%p29_p0, %s35_s23), %s761_s18 }
   0xa   : > { %s120_s24 = ssub.s32 %s757_s17, %s948_s22  ;;  %p842_p3 = por %p137_p2, %p136_p1 }
   0xb   : > { %p37_p4 = scmp.ge.s32.totalorder %s950_s23, 2  ;;  %p143_p6 = scmp.eq.s32.totalorder %s528_s21, 15 }
   0xc   : > { %p531_p7 = scmp.ge.s32.totalorder %s765_s19, 1  ;;  %p187_p9 = scmp.lt.s32.totalorder %s765_s19, 17 }
   0xd   : > { %s952_s23 = smov (%p37_p4, %s950_s23), 0  ;;  %p851_p8 = por %p143_p6, %p142_p5 }
   0xe   : > { %s119_s27 = ssub.s32 %s761_s18, %s952_s23  ;;  %s126_s28 = sadd.s32 1, %s745_s14 }
   0xf   : > { %s121_s29 = sor.u32 %s120_s24, %s119_s27  ;;  %p188_p10 = pnand %p531_p7, %p187_p9 }
  0x10   : > { %p124_p11 = scmp.eq.s32.totalorder %s121_s29, 0  ;;  %p230_p12 = scmp.lt.s32.totalorder (!%p188_p10), %s749_s15, 7  ;;  %v767_v0 = vmov (!%p188_p10), 0.0|0.0   ;;  %vm768_vm0 = vmmov (!%p188_p10), 0   ;;  %v769_v1 = vmov (!%p188_p10), 0.0   ;;  %vm250_vm1 = vcmask (!%p188_p10), 1040384  }
  0x11   : > { %191 = sbr.rel (%p188_p10) target bundleno = 479 (0x1df), region = 32  ;;  %p223_p13 = scmp.lt.s32.totalorder (!%p188_p10), %s753_s16, 1  ;;  %583 = vmatprep.subr.bf16.mxu0 (!%p188_p10), %v767_v0  ;;  %567 = vmatprep.mubr.msk.f32.mxu0 (!%p188_p10), %vm768_vm0, %v769_v1  ;;  %vm246_vm2 = vcmask (!%p188_p10), 269312   ;;  %vm405_vm3 = vcmask (!%p188_p10), 64512  }
  0x12   : > { %s860_s30 = scalar_select %p124_p11, %s745_s14, %s126_s28  }
  0x13   : > { %589 = vmatprep.subr.bf16.mxu1 (!%p188_p10), %v767_v0  ;;  %580 = vmatprep.mubr.msk.f32.mxu1 (!%p188_p10), %vm768_vm0, %v769_v1 }
  0x18   : > { %s231_s4 = scalar_select %p230_p12, %s749_s15, 7 }
  0x19   : > { %s224_s5 = scalar_select %p223_p13, %s753_s16, 1 }
  0x1a   : > { %s595_s6 = smul.u32 40, %s231_s4  ;;  %s220_s4 = sand.u32 1, %s741_s13  }
  0x1b   : > { %s596_s7 = smul.u32 40, %s224_s5  ;;  %s533_s24 = sshll.u32 %s224_s5, 3 }
  0x1c   : > { %s234_s10 = scalar_lea.vmem %s935_s1, %s595_s6  ;;  %s229_s29 = scalar_lea.vmem %s934_s0, %s533_s24 }
  0x1d   : > { %v241_v2 = vld [vmem:[%s234_s10] sm:$0xff]  ;;  %v242_v3 = vld [vmem:[%s234_s10 + $0x8] sm:$0xff]  ;;  %v243_v4 = vld [vmem:[%s234_s10 + $0x10] sm:$0xff]  ;;  %s239_s21 = scalar_lea.vmem %s936_s2, %s596_s7  ;;  %s532_s5 = sshll.u32 %s220_s4, 3 }
  0x1e   : > { %v584_v5 = vpack.c.bf16 %v242_v3, %v241_v2  ;;  %v244_v6 = vld [vmem:[%s234_s10 + $0x18] sm:$0xff]  ;;  %v324_v7 = vld [vmem:[%s239_s21] sm:$0xff]  ;;  %v325_v8 = vld [vmem:[%s239_s21 + $0x8] sm:$0xff]  ;;  %s541_s6 = sshll.u32 %s753_s16, 3  ;;  %s222_s9 = scalar_lea.vmem [#allocation2], %s532_s5 }
  0x1f   : > { %v326_v9 = vld [vmem:[%s239_s21 + $0x10] sm:$0xff]  ;;  %v587_v10 = vpack.c.bf16 %v244_v6, %v243_v4  ;;  %v590_v11 = vpack.c.bf16 %v325_v8, %v324_v7  ;;  %v327_v12 = vld [vmem:[%s239_s21 + $0x18] sm:$0xff]  ;;  %v245_v14 = vld [vmem:[%s234_s10 + $0x20] sm:$0x1]  ;;  %s420_s7 = sadd.s32 %s749_s15, %s541_s6  ;;  %s424_s10 = sshll.u32 %s222_s9, 4  ;;  %s883_s10 = int_to_ptr.vmem [resolvable:$true] %s424_s10 }
  0x20   : > { %585 = vmatpush3.bf16.msra.mxu0 %v584_v5  ;;  %v593_v13 = vpack.c.bf16 %v327_v12, %v326_v9  ;;  %v240_v15 = vld [vmem:[%s229_s29] sm:$0xff]  ;;  %s542_s8 = sshll.u32 %s420_s7, 7  ;;  %s671_s16 = scalar_lea.vmem %s883_s10, 128 }
  0x21   : > { %586 = vmatprep.subr.bf16.mxu0 %v767_v0  ;;  %591 = vmatpush3.bf16.msra.mxu1 %v590_v11  ;;  %v328_v16 = vld [vmem:[%s239_s21 + $0x20] sm:$0x1]  ;;  %s881_s24 = scalar_lea.hbm %s937_s3, %s542_s8  ;;  %s408_s21 = scalar_lea.sflag [#allocation3], %s220_s4 }
  0x22   : > { %592 = vmatprep.subr.bf16.mxu1 %v767_v0  ;;  %p672_p0 = scmp.ne.s32.totalorder %s883_s10, %s671_s16  ;;  %s770_s15 = smov [#allocation2]  }
  0x23   : > { %s675_s27 = sshll.u32 %s770_s15, 4  ;;  %s676_s27 = int_to_ptr.vmem [resolvable:$false] %s675_s27 }
  0x24   : > { %588 = vmatpush3.bf16.msra.mxu0 %v587_v10  ;;  %p673_p1 = pnand %p672_p0, %p842_p3  ;;  %s677_s28 = scalar_lea.vmem %s676_s27, 256 }
  0x25   : > { %565 = vmatprep.subr.mxu0 %v769_v1  ;;  %594 = vmatpush3.bf16.msra.mxu1 %v593_v13  ;;  %p678_p4 = scmp.lt.s32.totalorder %s883_s10, %s676_s27  ;;  %p679_p5 = scmp.lt.s32.totalorder %s677_s28, %s671_s16 }
  0x26   : > { %578 = vmatprep.subr.mxu1 %v769_v1  ;;  %p674_p2 = pneg %p673_p1 }
  0x27   : > { %p680_p6 = por %p679_p5, %p678_p4 }
  0x28   : > { %566 = vmatpush3.msk.msra.mxu0 %vm250_vm1, %v245_v14 }
  0x29   : > { %568 = vmatmul.mubr.msk.f32.vlgmr.msra.gmra.mrb[0].mxu0 %vm246_vm2, %v240_v15  ;;  %579 = vmatpush3.msk.msra.mxu1 %vm250_vm1, %v328_v16  ;;  %p681_p7 = pnand %p680_p6, %p674_p2 }
  0xfc   : > { %v320_v17 = vpop.f32.mrb[0].mxu0 }
  0xfd   : > { %v569_v18 = vpop.f32.mrb[1].mxu0  ;;  %581 = vmatmul.mubr.msk.f32.vlgmr.msra.gmra.mrb[0].mxu1 %vm246_vm2, %v320_v17 }
 0x1d0   : > { %v401_v19 = vpop.f32.mrb[0].mxu1 }
 0x1d1   : > { %406 = vst.msk [vmem:[%s222_s9] sm:$0xff] %vm405_vm3, %v401_v19  ;;  %v582_v20 = vpop.f32.mrb[1].mxu1 }
 0x1d2   : > { %684 = shalt.err (!%p681_p7)
}
 0x1d3   : > { %s685_s29 = scalar_lea.hbm %s881_s24, 128  ;;  %s689_s6 = scalar_lea.hbm %s937_s3, 2048 }
 0x1d4   : > { %p686_p9 = scmp.ne.s32.totalorder %s881_s24, %s685_s29  ;;  %p690_p12 = scmp.lt.u32.totalorder %s881_s24, %s937_s3 }
 0x1d5   : > { %p691_p13 = scmp.lt.u32.totalorder %s689_s6, %s685_s29  ;;  %p693_p1 = scmp.lt.u32.totalorder %s685_s29, %s881_s24 }
 0x1d6   : > { %p687_p10 = pnand %p686_p9, %p842_p3 }
 0x1d7   : > { %p692_p0 = por %p691_p13, %p690_p12 }
 0x1d8   : > { %p688_p11 = pneg %p687_p10 }
 0x1d9   : > { %p694_p2 = por %p693_p1, %p692_p0 }
 0x1db   : > { %p695_p4 = pnand %p694_p2, %p688_p11 }
 0x1dd   : > { %698 = shalt.err (!%p695_p4)
}
 0x1de   : > { %597 = dma.vmem_to_hbm [thread:$0]  (%p842_p3), %s883_s10, 128, %s881_s24, %s408_s21  }
 0x1df PF: > { %p603_p5 = scmp.ge.s32.totalorder %s765_s19, 2  ;;  %s436_s9 = sand.u32 1, %s737_s12  }
 0x1e0   : > { %s437_s11 = scalar_lea.sflag [#allocation3], %s436_s9 }
 0x1e1   : > { %p600_p6 = pnand %p603_p5, %p851_p8 }
 0x1e3   : > { %732 = dma.done.wait (!%p600_p6), %s437_s11, 128  }
 0x1e4   : > { %734 = vsyncadd (!%p600_p6), %s437_s11, 4294967168  ;;  %s16_s19 = sadd.s32 1, %s765_s19   ;;  %s940_s12 = smov %s741_s13 }
 0x1e5   : > { %p13_p7 = scmp.ge.s32.totalorder %s16_s19, 18   ;;  %s941_s13 = smov %s745_s14 }
 0x1e6   : > { %s942_s14 = smov %s860_s30  ;;  %s943_s15 = smov %s757_s17 }
 0x1e7   : > { %s944_s16 = smov %s761_s18  ;;  %s945_s17 = smov %s948_s22 }
 0x1e8   : > { %s946_s18 = smov %s952_s23  ;;  %15 = sbr.rel (!%p13_p7) target bundleno = 5 (0x5), region = 73 }
 0x1ef   :  { %442 = vsyncpa [#allocation3], 1 }
 0x1f0   :  { %444 = vsyncpa [#allocation3 + $0x1], 1 }

</bundles_post_ra>
